<compile_context>
chip_gen: v7x
topology: tpu7x:2x2x1
jax: 0.10.0
libtpu: 0.0.40
codegen_flags: <defaults>
</compile_context>

<pallas_src>
import math
from functools import partial

import numpy as np
import jax
import jax.numpy as jnp
from jax.experimental import pallas as pl
from jax.experimental.pallas import tpu as pltpu


def _normalized_fir(fir_kernel):
    k1 = np.asarray(fir_kernel, dtype=np.float32)
    return (k1 / k1.sum()).astype(np.float32)


def _pad_for(dim, K):
    return (math.ceil(K / 2) - 1) if dim % 2 == 0 else (math.ceil((K + 1) / 2) - 1)


def _col_matrix(W, Wo, pad_w, k1n):
    """(W, Wo) banded matrix: out[:, j] = sum_w tmp[:, w] * D[w, j].

    Encodes the stride-2 subsampling + zero padding along W, so the lane-direction pass is a
    plain MXU matmul (no strided lane access needed)."""
    K = k1n.shape[0]
    D = np.zeros((W, Wo), np.float32)
    for j in range(Wo):
        for b in range(K):
            w = 2 * j + b - pad_w
            if 0 <= w < W:
                D[w, j] += k1n[b]
    return D


def _row_taps(H, Ho, pad_h, k1n):
    """Static taps for the H (sublane) pass on the row-parity-split layout.

    Each tap is (coef, parity, out_row_start, n_rows, src_row_start): output rows
    [i0, i0+n) accumulate coef * x_parity[hh0 : hh0+n, :].  Zero padding along H is folded
    into the (i0, n) ranges, so all slices are contiguous and in-bounds."""
    K = k1n.shape[0]
    taps = []
    for a in range(K):
        s = a - pad_h                      # original row = 2*i + s
        parity = s % 2                     # which half of the flattened lanes
        d = s // 2                         # row index within that parity half = i + d
        n_par = (H + 1) // 2 if parity == 0 else H // 2
        i0 = max(0, -d)
        i1 = min(Ho - 1, n_par - 1 - d)
        n = i1 - i0 + 1
        if n <= 0:
            continue
        taps.append((float(k1n[a]), parity, i0, n, i0 + d))
    # Put a full-coverage tap first so tmp can be initialized by a store (no zeroing pass).
    taps.sort(key=lambda t: not (t[2] == 0 and t[3] == Ho))
    return taps


def _make_kernel(taps, B, Ho, W):
    init_with_first = bool(taps) and taps[0][2] == 0 and taps[0][3] == Ho

    def kernel(x_ref, dcol_ref, out_ref, tmp_ref):
        # x_ref   : (B, H//2, 2*W)  row-parity-flattened input planes
        # dcol_ref: (W, Wo)         banded column-downsample matrix (constant block)
        # out_ref : (B, Ho, Wo)
        # tmp_ref : (Ho, W) f32     VMEM scratch accumulator for the row pass
        dcol = dcol_ref[...]
        for b in range(B):
            if not init_with_first:
                tmp_ref[...] = jnp.zeros_like(tmp_ref)
            for t, (coef, parity, i0, n, hh0) in enumerate(taps):
                xs = x_ref[b, hh0:hh0 + n, parity * W:(parity + 1) * W]
                term = coef * xs.astype(jnp.float32)      # f32 accumulate even for bf16 in
                if t == 0 and init_with_first:
                    tmp_ref[...] = term
                else:
                    tmp_ref[i0:i0 + n, :] = tmp_ref[i0:i0 + n, :] + term
            out_ref[b] = jnp.dot(
                tmp_ref[...], dcol,
                preferred_element_type=jnp.float32,
                precision=jax.lax.Precision.HIGHEST,
            ).astype(out_ref.dtype)

    return kernel


def _planes_per_block(NC, H, W, Ho, Wo, itemsize):
    budget = 10 * 1024 * 1024               # stays well under every gen's scoped VMEM
    fixed = Ho * W * 4 + 2 * W * Wo * 4     # tmp scratch + (double-buffered) col matrix
    per_plane = 2 * H * W * itemsize + 2 * Ho * Wo * itemsize   # dbl-buffered in + out
    cap = max(1, (budget - fixed) // per_plane)
    cap = int(min(cap, max(1, NC // 8), 8))  # >=8 grid steps (pipeline+megacore), small unroll
    for b in range(cap, 0, -1):              # largest divisor of NC, keeps the grid exact
        if NC % b == 0:
            return b
    return 1


@partial(jax.jit, static_argnames=("fir_kernel",))
def downsample_fir(x_nchw, fir_kernel=(1.0, 3.0, 3.0, 1.0)):
    k1n = _normalized_fir(fir_kernel)
    K = int(k1n.shape[0])
    N, C, H, W = x_nchw.shape
    if H % 2 != 0:
        # TODO(synk): odd input height needs a different row-parity split; not implemented.
        raise NotImplementedError("downsample_fir requires an even input height")

    pad_h = _pad_for(H, K)
    pad_w = _pad_for(W, K)
    Ho = (H + 2 * pad_h - K) // 2 + 1
    Wo = (W + 2 * pad_w - K) // 2 + 1

    NC = N * C
    Hh = H // 2
    # Free bitcast reshape: row hh of the (Hh, 2W) view holds original rows (2hh | 2hh+1) in
    # its two lane halves.  No transpose, no pad, no phase materialization in HBM.
    x2 = x_nchw.reshape(NC, Hh, 2 * W)
    dcol = jnp.asarray(_col_matrix(W, Wo, pad_w, k1n))

    B = _planes_per_block(NC, H, W, Ho, Wo, jnp.dtype(x_nchw.dtype).itemsize)
    taps = _row_taps(H, Ho, pad_h, k1n)
    kernel = _make_kernel(taps, B, Ho, W)

    out = pl.pallas_call(
        kernel,
        out_shape=jax.ShapeDtypeStruct((NC, Ho, Wo), x_nchw.dtype),
        grid=(NC // B,),
        in_specs=[
            pl.BlockSpec((B, Hh, 2 * W), lambda p: (p, 0, 0)),
            pl.BlockSpec((W, Wo), lambda p: (0, 0)),   # constant block index -> fetched once
        ],
        out_specs=pl.BlockSpec((B, Ho, Wo), lambda p: (p, 0, 0)),
        scratch_shapes=[pltpu.VMEM((Ho, W), jnp.float32)],
        compiler_params=pltpu.CompilerParams(
            dimension_semantics=("parallel",),
            vmem_limit_bytes=32 * 1024 * 1024,
        ),
    )(x2, dcol)
    return out.reshape(N, C, Ho, Wo)


def downsample_ref(x_nchw, fir_kernel=(1.0, 3.0, 3.0, 1.0)):
    # Pure-JAX reference (mirrors F.conv2d with groups=C, stride=2).
    k1 = jnp.asarray(fir_kernel, jnp.float32)
    k2 = jnp.outer(k1, k1)
    k2 = k2 / jnp.sum(k2)
    K = int(k2.shape[-1])
    N, C, H, W = x_nchw.shape
    pad_h = _pad_for(H, K)
    pad_w = _pad_for(W, K)
    w = jnp.tile(k2[None, None, :, :], (C, 1, 1, 1))
    return jax.lax.conv_general_dilated(
        x_nchw, w,
        window_strides=(2, 2),
        padding=((pad_h, pad_h), (pad_w, pad_w)),
        dimension_numbers=("NCHW", "OIHW", "NCHW"),
        feature_group_count=C,
        precision=jax.lax.Precision.HIGHEST,
    )


if __name__ == "__main__":
    key = jax.random.PRNGKey(0)
    x = jax.random.normal(key, (2, 4, 16, 16), dtype=jnp.float32)  # NCHW, like PyTorch

    out = jax.block_until_ready(downsample_fir(x))
    assert out.shape == (2, 4, 8, 8), out.shape

    ref = downsample_ref(x)
    err = float(jnp.max(jnp.abs(out - ref)))
    assert err < 1e-4, err
    print("KERNEL_OK")
</pallas_src>

<mosaic_0001>
module attributes {stable_mosaic.version = 11 : i64} {
  func.func @kernel(%arg0: i32, %arg1: memref<1x8x32xf32, #tpu.memory_space<vmem>>, %arg2: memref<16x8xf32, #tpu.memory_space<vmem>>, %arg3: memref<1x8x8xf32, #tpu.memory_space<vmem>>, %arg4: memref<8x16xf32, #tpu.memory_space<vmem>>) attributes {dimension_semantics = [#tpu.dimension_semantics<parallel>], iteration_bounds = array<i64: 8>, scalar_prefetch = 0 : i64, scratch_operands = 1 : i64, tpu.core_type = #tpu.core_type<tc>, window_params = [{transform_indices = @transform_0, window_bounds = array<i64: 1, 8, 32>}, {pipeline_mode = #tpu.pipeline_mode<synchronous>, transform_indices = @transform_1, window_bounds = array<i64: 16, 8>}, {transform_indices = @transform_2, window_bounds = array<i64: 1, 8, 8>}]} {
    %c0 = arith.constant 0 : index
    %c0_0 = arith.constant 0 : index
    %0 = vector.load %arg2[%c0, %c0_0] : memref<16x8xf32, #tpu.memory_space<vmem>>, vector<16x8xf32>
    %c0_1 = arith.constant 0 : index
    %c0_2 = arith.constant 0 : index
    %c0_3 = arith.constant 0 : index
    %1 = vector.load %arg1[%c0_1, %c0_2, %c0_3] : memref<1x8x32xf32, #tpu.memory_space<vmem>>, vector<1x8x16xf32>
    %2 = vector.shape_cast %1 : vector<1x8x16xf32> to vector<8x16xf32>
    %cst = arith.constant 3.750000e-01 : f32
    %3 = vector.broadcast %cst : f32 to vector<8x16xf32>
    %4 = arith.mulf %3, %2 : vector<8x16xf32>
    %c0_4 = arith.constant 0 : index
    %c0_5 = arith.constant 0 : index
    %5 = vector.load %arg4[%c0_4, %c0_5] : memref<8x16xf32, #tpu.memory_space<vmem>>, vector<8x16xf32>
    tpu.vector_store %arg4[%c0_4, %c0_5], %4 {strides = array<i32>} : memref<8x16xf32, #tpu.memory_space<vmem>>, vector<8x16xf32>,
    %c0_6 = arith.constant 0 : index
    %c0_7 = arith.constant 0 : index
    %c16 = arith.constant 16 : index
    %6 = vector.load %arg1[%c0_6, %c0_7, %c16] : memref<1x8x32xf32, #tpu.memory_space<vmem>>, vector<1x8x16xf32>
    %7 = vector.shape_cast %6 : vector<1x8x16xf32> to vector<8x16xf32>
    %cst_8 = arith.constant 3.750000e-01 : f32
    %8 = vector.broadcast %cst_8 : f32 to vector<8x16xf32>
    %9 = arith.mulf %8, %7 : vector<8x16xf32>
    %c0_9 = arith.constant 0 : index
    %c0_10 = arith.constant 0 : index
    %10 = vector.load %arg4[%c0_9, %c0_10] : memref<8x16xf32, #tpu.memory_space<vmem>>, vector<8x16xf32>
    %11 = arith.addf %10, %9 : vector<8x16xf32>
    %c0_11 = arith.constant 0 : index
    %c0_12 = arith.constant 0 : index
    %12 = vector.load %arg4[%c0_11, %c0_12] : memref<8x16xf32, #tpu.memory_space<vmem>>, vector<8x16xf32>
    tpu.vector_store %arg4[%c0_11, %c0_12], %11 {strides = array<i32>} : memref<8x16xf32, #tpu.memory_space<vmem>>, vector<8x16xf32>,
    %c0_13 = arith.constant 0 : index
    %c0_14 = arith.constant 0 : index
    %c16_15 = arith.constant 16 : index
    %13 = vector.load %arg1[%c0_13, %c0_14, %c16_15] : memref<1x8x32xf32, #tpu.memory_space<vmem>>, vector<1x7x16xf32>
    %14 = vector.shape_cast %13 : vector<1x7x16xf32> to vector<7x16xf32>
    %cst_16 = arith.constant 1.250000e-01 : f32
    %15 = vector.broadcast %cst_16 : f32 to vector<7x16xf32>
    %16 = arith.mulf %15, %14 : vector<7x16xf32>
    %c1 = arith.constant 1 : index
    %c0_17 = arith.constant 0 : index
    %17 = vector.load %arg4[%c1, %c0_17] : memref<8x16xf32, #tpu.memory_space<vmem>>, vector<7x16xf32>
    %18 = arith.addf %17, %16 : vector<7x16xf32>
    %c1_18 = arith.constant 1 : index
    %c0_19 = arith.constant 0 : index
    %19 = vector.load %arg4[%c1_18, %c0_19] : memref<8x16xf32, #tpu.memory_space<vmem>>, vector<7x16xf32>
    tpu.vector_store %arg4[%c1_18, %c0_19], %18 {strides = array<i32>} : memref<8x16xf32, #tpu.memory_space<vmem>>, vector<7x16xf32>,
    %c0_20 = arith.constant 0 : index
    %c1_21 = arith.constant 1 : index
    %c0_22 = arith.constant 0 : index
    %20 = vector.load %arg1[%c0_20, %c1_21, %c0_22] : memref<1x8x32xf32, #tpu.memory_space<vmem>>, vector<1x7x16xf32>
    %21 = vector.shape_cast %20 : vector<1x7x16xf32> to vector<7x16xf32>
    %cst_23 = arith.constant 1.250000e-01 : f32
    %22 = vector.broadcast %cst_23 : f32 to vector<7x16xf32>
    %23 = arith.mulf %22, %21 : vector<7x16xf32>
    %c0_24 = arith.constant 0 : index
    %c0_25 = arith.constant 0 : index
    %24 = vector.load %arg4[%c0_24, %c0_25] : memref<8x16xf32, #tpu.memory_space<vmem>>, vector<7x16xf32>
    %25 = arith.addf %24, %23 : vector<7x16xf32>
    %c0_26 = arith.constant 0 : index
    %c0_27 = arith.constant 0 : index
    %26 = vector.load %arg4[%c0_26, %c0_27] : memref<8x16xf32, #tpu.memory_space<vmem>>, vector<7x16xf32>
    tpu.vector_store %arg4[%c0_26, %c0_27], %25 {strides = array<i32>} : memref<8x16xf32, #tpu.memory_space<vmem>>, vector<7x16xf32>,
    %c0_28 = arith.constant 0 : index
    %c0_29 = arith.constant 0 : index
    %27 = vector.load %arg4[%c0_28, %c0_29] : memref<8x16xf32, #tpu.memory_space<vmem>>, vector<8x16xf32>
    %cst_30 = arith.constant dense<0.000000e+00> : vector<8x8xf32>
    %28 = tpu.matmul %27, %0, %cst_30 {dimension_numbers = #tpu.dot_dimension_numbers<[1], [0], [0], [1], [0, 0, 1, 1], [], []>, precision = #tpu.contract_precision<fp32>} : vector<8x16xf32>, vector<16x8xf32>, vector<8x8xf32> -> vector<8x8xf32>
    %c0_31 = arith.constant 0 : index
    %c0_32 = arith.constant 0 : index
    %c0_33 = arith.constant 0 : index
    %29 = vector.load %arg3[%c0_31, %c0_32, %c0_33] : memref<1x8x8xf32, #tpu.memory_space<vmem>>, vector<1x8x8xf32>
    %30 = vector.shape_cast %29 : vector<1x8x8xf32> to vector<8x8xf32>
    %31 = vector.shape_cast %28 : vector<8x8xf32> to vector<1x8x8xf32>
    tpu.vector_store %arg3[%c0_31, %c0_32, %c0_33], %31 {strides = array<i32>} : memref<1x8x8xf32, #tpu.memory_space<vmem>>, vector<1x8x8xf32>,
    return
  }
  func.func @transform_0(%arg0: i32) -> (i32, i32, i32) {
    %c0_i32 = arith.constant 0 : i32
    %c0_i32_0 = arith.constant 0 : i32
    %c0_i32_1 = arith.constant 0 : i32
    return %arg0, %c0_i32, %c0_i32_0 : i32, i32, i32
  }
  func.func @transform_1(%arg0: i32) -> (i32, i32) {
    %c0_i32 = arith.constant 0 : i32
    %c0_i32_0 = arith.constant 0 : i32
    %c0_i32_1 = arith.constant 0 : i32
    return %c0_i32, %c0_i32_0 : i32, i32
  }
  func.func @transform_2(%arg0: i32) -> (i32, i32, i32) {
    %c0_i32 = arith.constant 0 : i32
    %c0_i32_0 = arith.constant 0 : i32
    %c0_i32_1 = arith.constant 0 : i32
    return %arg0, %c0_i32, %c0_i32_0 : i32, i32, i32
  }
}

</mosaic_0001>

<bundles_post_ra>
// kernel: downsample_fir.1
= control target key start
LH: loop header
LB: loop body
LE: loop exit
PB: predicated region body
PF: predicated region fallthrough
CT: control target
= control target key end

     0   :  { %7 = vsyncpa [#allocation4], 0  ;;  %s1051_s0 = inlined_call_operand.vmem [shape: f32[8,8,32], index: 0, kind: input, shape index: {}]   ;;  %s1052_s1 = inlined_call_operand.vmem [shape: f32[16,8], index: 1, kind: input, shape index: {}]   ;;  %s1053_s2 = inlined_call_operand.hbm [shape: f32[8,8,8], index: 2, kind: output, shape index: {}]  }
   0x1   :  { %9 = vsyncpa [#allocation4 + $0x1], 0  ;;  %s931_s9 = smov 0   ;;  %s933_s10 = smov 0  }
   0x2   :  { %s935_s11 = smov 0   ;;  %s937_s12 = smov 0  }
   0x3 LB: > { %s952_s13 = sadd.s32 4294967295, %s909_s12   ;;  %s707_s14 = sadd.s32 4294967294, %s909_s12   ;;  %s909_s12 = sphi %s937_s12, %s1059_s12   ;;  %s905_s11 = sphi %s935_s11, %s1058_s11   ;;  %s901_s10 = sphi %s933_s10, %s1057_s10   ;;  %s897_s9 = sphi %s931_s9, %s1056_s9  }
   0x4   : > { %s956_s15 = sadd.s32 1, %s909_s12   ;;  %s69_s16 = sadd.s32 1, %s905_s11 }
   0x5   : > { %s66_s17 = ssub.s32 %s909_s12, %s956_s15  ;;  %p79_p0 = scmp.ne.s32.totalorder %s905_s11, %s901_s10 }
   0x6   : > { %p67_p1 = scmp.eq.s32.totalorder %s66_s17, 0  ;;  %p80_p2 = scmp.eq.s32.totalorder %s952_s13, 7 }
   0x7   : > { %p85_p3 = scmp.ne.s32.totalorder %s901_s10, %s897_s9  ;;  %p86_p4 = scmp.eq.s32.totalorder %s707_s14, 7 }
   0x8   : > { %s967_s18 = scalar_select %p67_p1, %s905_s11, %s69_s16  }
   0x9   : > { %p969_p5 = por %p80_p2, %p79_p0  ;;  %p973_p6 = por %p86_p4, %p85_p3 }
   0xa   : > { %p710_p7 = scmp.ge.s32.totalorder %s909_s12, 1  ;;  %p114_p8 = scmp.lt.s32.totalorder %s909_s12, 9 }
   0xc   : > { %p115_p9 = pnand %p710_p7, %p114_p8 }
   0xd   : > { %p135_p10 = scmp.lt.s32.totalorder (!%p115_p9), %s952_s13, 7  ;;  %vm143_vm0 = vcmask (!%p115_p9), 130048   ;;  %s911_s26 = smov (!%p115_p9), 112   ;;  %v139_v4 = vld [vmem:[%s1052_s1] sm:$0xff] (!%p115_p9)  ;;  %v140_v5 = vld [vmem:[%s1052_s1 + $0x8] sm:$0xff] (!%p115_p9)  ;;  %v912_v6 = vmov (!%p115_p9), 0.0|0.0  }
   0xe   : > { %118 = sbr.rel (%p115_p9) target bundleno = 428 (0x1ac), region = 28  ;;  %786 = vmatprep.subr.bf16.mxu0 (!%p115_p9), %v912_v6  ;;  %v174_v7 = vand.u32 (!%p115_p9), 4294901760, %v139_v4  ;;  %v177_v8 = vand.u32 (!%p115_p9), 4294901760, %v140_v5  ;;  %777 = vmatprep.subr.bf16.mxu1 (!%p115_p9), %v912_v6  ;;  %vm913_vm1 = vmmov (!%p115_p9), 0   ;;  %v914_v9 = vmov (!%p115_p9), 0.0   ;;  %s132_s3 = sand.u32 (!%p115_p9), 1, %s901_s10  }
   0xf   : > { %760 = vmatprep.mubr.msk.f32.mxu0 (!%p115_p9), %vm913_vm1, %v914_v9  ;;  %739 = vmatprep.mubr.msk.f32.mxu1 (!%p115_p9), %vm913_vm1, %v914_v9  ;;  %vm162_vm2 = vcmask (!%p115_p9), 129024   ;;  %s711_s4 = sshll.u32 (!%p115_p9), %s132_s3, 3  ;;  %s714_s5 = sshll.u32 (!%p115_p9), %s952_s13, 7  ;;  %vm632_vm3 = vcmask (!%p115_p9), 64512  }
  0x10   : > { %v778_v10 = vpack.c.bf16 (!%p115_p9), %v177_v8, %v174_v7  ;;  %v252_v11 = vsub.f32 (!%p115_p9), %v139_v4, %v174_v7  ;;  %v259_v12 = vsub.f32 (!%p115_p9), %v140_v5, %v177_v8  ;;  %s134_s6 = scalar_lea.vmem (!%p115_p9), [#allocation3], %s711_s4  ;;  %s1009_s16 = scalar_lea.hbm (!%p115_p9), %s1053_s2, %s714_s5 }
  0x11   : > { %s648_s7 = sshll.u32 (!%p115_p9), %s134_s6, 4  ;;  %s635_s17 = scalar_lea.sflag (!%p115_p9), [#allocation4], %s132_s3  ;;  %s1011_s7 = int_to_ptr.vmem [resolvable:$true] %s648_s7 }
  0x12   : > { %788 = vmatpush3.bf16.msra.mxu0 (!%p115_p9), %v778_v10  ;;  %779 = vmatpush3.bf16.msra.mxu1 (!%p115_p9), %v778_v10  ;;  %v253_v13 = vand.u32 (!%p115_p9), 4294901760, %v252_v11  ;;  %v260_v14 = vand.u32 (!%p115_p9), 4294901760, %v259_v12  ;;  %v784_v21 = vpack.c.bf16 (!%p115_p9), %v259_v12, %v252_v11 }
  0x13   : > { %780 = vmatprep.subr.bf16.mxu1 (!%p115_p9), %v912_v6  ;;  %789 = vmatprep.subr.bf16.mxu0 (!%p115_p9), %v912_v6 }
  0x14   : > { %v254_v15 = vsub.f32 (!%p115_p9), %v252_v11, %v253_v13  ;;  %v261_v16 = vsub.f32 (!%p115_p9), %v259_v12, %v260_v14  ;;  %v790_v17 = vpack.c.bf16 (!%p115_p9), %v260_v14, %v253_v13 }
  0x15   : > { %s136_s21 = scalar_select %p135_p10, %s952_s13, 7 }
  0x16   : > { %v255_v18 = vand.u32 4294901760, %v254_v15  ;;  %v262_v19 = vand.u32 4294901760, %v261_v16  ;;  %s915_s13 = smov [#allocation3]  }
  0x17   : > { %s712_s22 = sshll.u32 %s136_s21, 3  ;;  %s847_s21 = scalar_lea.vmem %s1011_s7, 128 }
  0x18   : > { %s984_s25 = scalar_lea.vmem %s1051_s0, %s712_s22  ;;  %v781_v20 = vpack.c.bf16 %v262_v19, %v255_v18  ;;  %p848_p11 = scmp.ne.s32.totalorder %s1011_s7, %s847_s21 }
  0x19   : > { %v145_v0 = vld [vmem:[%s984_s25] sm:$0xff]  ;;  %s851_s22 = sshll.u32 %s915_s13, 4  ;;  %s852_s22 = int_to_ptr.vmem [resolvable:$false] %s851_s22 }
  0x1a   : > { %v154_v1 = vld [vmem:[%s984_s25] sm:$0x7f]  ;;  %v146_v2 = vmul.f32 0.375, %v145_v0  ;;  %p849_p12 = pnand %p848_p11, %p969_p5  ;;  %s853_s23 = scalar_lea.vmem %s852_s22, 256 }
  0x1b   : > { %v155_v3 = vmul.f32 0.125, %v154_v1  ;;  %v164_v28 = vld [vmem:[%s984_s25 + $0x1] sm:$0x7f]  ;;  %p854_p0 = scmp.lt.s32.totalorder %s1011_s7, %s852_s22  ;;  %p855_p1 = scmp.lt.s32.totalorder %s853_s23, %s847_s21 }
  0x1c   : > { %149 = vrot.lane.b32.xlu0 %v146_v2, %s911_s26  ;;  %144 = vst.msk [vmem:[#allocation2] sm:$0xff] %vm143_vm0, %v146_v2  ;;  %v165_v29 = vmul.f32 0.125, %v164_v28  ;;  %p850_p13 = pneg %p849_p12 }
  0x1d   : > { %p856_p2 = por %p855_p1, %p854_p0 }
  0x1f   : > { %p857_p3 = pnand %p856_p2, %p850_p13 }
  0x20   : > { %158 = vrot.lane.b32.xlu0 %v155_v3, %s911_s26 }
  0x23   : > { %v147_v22 = vld [vmem:[#allocation2] sm:$0xff] }
  0x8e   : > { %v150_v23 = vpop.permute.xlu0 %149 }
  0x8f   : > { %v152_v24 = vadd.f32 %v150_v23, %v147_v22 }
  0x91   : > { %153 = vst.msk [vmem:[#allocation2] sm:$0xff] %vm143_vm0, %v152_v24 }
  0x92   : > { %v159_v25 = vpop.permute.xlu0 %158 }
  0x98   : > { %v156_v26 = vld [vmem:[#allocation2 + $0x1] sm:$0x7f] }
  0x99   : > { %v161_v27 = vadd.f32 %v159_v25, %v156_v26 }
  0x9b   : > { %163 = vst.msk [vmem:[#allocation2 + $0x1] sm:$0x7f] %vm162_vm2, %v161_v27 }
  0xa2   : > { %v166_v30 = vld [vmem:[#allocation2] sm:$0x7f] }
  0xa3   : > { %v167_v31 = vadd.f32 %v166_v30, %v165_v29 }
  0xa5   : > { %168 = vst.msk [vmem:[#allocation2] sm:$0x7f] %vm162_vm2, %v167_v31 }
  0xac   : > { %v169_v32 = vld [vmem:[#allocation2] sm:$0xff] }
  0xad   : > { %v171_v33 = vsel %vm143_vm0, %v169_v32, 0 }
  0xae   : > { %v240_v34 = vand.u32 4294901760, %v171_v33 }
  0xb0   : > { %v241_v35 = vsub.f32 %v171_v33, %v240_v34 }
  0xb2   : > { %v242_v36 = vand.u32 4294901760, %v241_v35 }
  0xb4   : > { %761 = vmatmul.mubr.f32.vlgmr.msra.gmra.mrb[0].mxu0 %v242_v36  ;;  %v243_v37 = vsub.f32 %v241_v35, %v242_v36 }
  0xb5   : > { %791 = vmatpush3.bf16.msra.mxu0 %v790_v17  ;;  %767 = vmatprep.mubr.msk.f32.mxu0 %vm913_vm1, %v914_v9 }
  0xb6   : > { %v244_v38 = vand.u32 4294901760, %v243_v37  ;;  %792 = vmatprep.subr.bf16.mxu0 %v912_v6 }
  0xb8   : > { %740 = vmatmul.mubr.f32.vlgmr.msra.gmra.mrb[0].mxu1 %v244_v38 }
  0xb9   : > { %782 = vmatpush3.bf16.msra.mxu1 %v781_v20  ;;  %746 = vmatprep.mubr.msk.f32.mxu1 %vm913_vm1, %v914_v9 }
  0xba   : > { %783 = vmatprep.subr.bf16.mxu1 %v912_v6 }
  0xbc   : > { %768 = vmatmul.mubr.f32.vlgmr.msra.gmra.mrb[0].mxu0 %v240_v34 }
  0xbd   : > { %794 = vmatpush3.bf16.msra.mxu0 %v778_v10  ;;  %774 = vmatprep.mubr.msk.f32.mxu0 %vm913_vm1, %v914_v9 }
  0xc0   : > { %747 = vmatmul.mubr.f32.vlgmr.msra.gmra.mrb[0].mxu1 %v240_v34 }
  0xc1   : > { %785 = vmatpush3.bf16.msra.mxu1 %v784_v21  ;;  %753 = vmatprep.mubr.msk.f32.mxu1 %vm913_vm1, %v914_v9 }
  0xc4   : > { %775 = vmatmul.mubr.f32.vlgmr.msra.gmra.mrb[0].mxu0 %v240_v34 }
  0xc8   : > { %754 = vmatmul.mubr.f32.vlgmr.msra.gmra.mrb[0].mxu1 %v241_v35 }
 0x197   : > { %v628_v39 = vpop.f32.mrb[0].mxu0 }
 0x198   : > { %v776_v40 = vpop.f32.mrb[1].mxu0 }
 0x19b   : > { %v403_v41 = vpop.f32.mrb[0].mxu1 }
 0x19c   : > { %v795_v42 = vadd.f32 %v628_v39, %v403_v41  ;;  %v755_v43 = vpop.f32.mrb[1].mxu1 }
 0x19e   : > { %633 = vst.msk [vmem:[%s134_s6] sm:$0xff] %vm632_vm3, %v795_v42 }
 0x19f   : > { %860 = shalt.err (!%p857_p3)
}
 0x1a0   : > { %s861_s24 = scalar_lea.hbm %s1009_s16, 128  ;;  %s865_s27 = scalar_lea.hbm %s1053_s2, 1024 }
 0x1a1   : > { %p862_p4 = scmp.ne.s32.totalorder %s1009_s16, %s861_s24  ;;  %p866_p9 = scmp.lt.u32.totalorder %s1009_s16, %s1053_s2 }
 0x1a2   : > { %p867_p10 = scmp.lt.u32.totalorder %s865_s27, %s861_s24  ;;  %p869_p12 = scmp.lt.u32.totalorder %s861_s24, %s1009_s16 }
 0x1a3   : > { %p863_p7 = pnand %p862_p4, %p969_p5 }
 0x1a4   : > { %p868_p11 = por %p867_p10, %p866_p9 }
 0x1a5   : > { %p864_p8 = pneg %p863_p7 }
 0x1a6   : > { %p870_p13 = por %p869_p12, %p868_p11 }
 0x1a8   : > { %p871_p0 = pnand %p870_p13, %p864_p8 }
 0x1aa   : > { %874 = shalt.err (!%p871_p0)
}
 0x1ab   : > { %804 = dma.vmem_to_hbm [thread:$0]  (%p969_p5), %s1011_s7, 128, %s1009_s16, %s635_s17  }
 0x1ac PF: > { %p810_p1 = scmp.ge.s32.totalorder %s909_s12, 2  ;;  %s660_s30 = sand.u32 1, %s897_s9  }
 0x1ad   : > { %s661_s3 = scalar_lea.sflag [#allocation4], %s660_s30 }
 0x1ae   : > { %p807_p2 = pnand %p810_p1, %p973_p6 }
 0x1b0   : > { %892 = dma.done.wait (!%p807_p2), %s661_s3, 128  }
 0x1b1   : > { %894 = vsyncadd (!%p807_p2), %s661_s3, 4294967168  ;;  %p12_p3 = scmp.ge.s32.totalorder %s956_s15, 10   ;;  %s1056_s9 = smov %s901_s10 }
 0x1b2   : > { %s1057_s10 = smov %s905_s11  ;;  %s1058_s11 = smov %s967_s18 }
 0x1b3   : > { %s1059_s12 = smov %s956_s15  ;;  %14 = sbr.rel (!%p12_p3) target bundleno = 3 (0x3), region = 63 }
 0x1ba   :  { %666 = vsyncpa [#allocation4], 1 }
 0x1bb   :  { %668 = vsyncpa [#allocation4 + $0x1], 1 }

</bundles_post_ra>
